<compile_context>
chip_gen: v7x
topology: tpu7x:2x2x1
jax: 0.10.0
libtpu: 0.0.40
codegen_flags: <defaults>
</compile_context>

<pallas_src>
import functools

import jax
import jax.numpy as jnp
from jax.experimental import pallas as pl
from jax.experimental.pallas import tpu as pltpu


def _round_up(x, m):
    return ((x + m - 1) // m) * m


def _round_down(x, m):
    return (x // m) * m


def _vmem_budgets():
    """(vmem_limit_bytes, per-pass working-set budget) per TPU generation."""
    try:
        kind = jax.devices()[0].device_kind.lower()
    except Exception:  # pragma: no cover - defensive
        kind = ""
    if ("v4" in kind) or ("v5" in kind) or ("v6" in kind):
        # 128 MiB physical VMEM: big blocks amortize the ~0.35 us per-step cost.
        return 64 * 1024 * 1024, 48 * 1024 * 1024
    # Conservative default (v7x has only 64 MiB VMEM per TensorCore).
    return 32 * 1024 * 1024, 24 * 1024 * 1024


# ---------------- Pass 1: tiled global spatial sum -> (B*C, 1) ---------------
def _pool_sum_kernel(x_ref, sum_ref, *, hw, t_lanes, mask_tail):
    # x_ref:   (R, T)  one lane tile of rows; each row is one (b, c) pair
    # sum_ref: (R, 1)  f32 accumulator, resident across the HW grid axis
    t = pl.program_id(1)

    @pl.when(t == 0)
    def _():
        sum_ref[...] = jnp.zeros_like(sum_ref)

    x = x_ref[...]
    if mask_tail:
        # Ragged HW tail: zero the out-of-range lanes before reducing.
        lane = jax.lax.broadcasted_iota(jnp.int32, x.shape, 1)
        x = jnp.where(lane < hw - t * t_lanes, x, jnp.zeros_like(x))
    sum_ref[...] += jnp.sum(x.astype(jnp.float32), axis=-1, keepdims=True)


# ---------------- Pass 2: lane-dense broadcast multiply ----------------------
def _scale_mul_kernel(x_ref, scale_ref, o_ref):
    # x_ref/o_ref: (R, T); scale_ref: (R, 1) f32. Multiply in f32, cast once.
    o_ref[...] = (x_ref[...] * scale_ref[...]).astype(o_ref.dtype)


def eca_forward(x, conv_w):
    """x: (B, C, H, W); conv_w: (k,) = Conv1d(1,1,k,bias=False) weight, squeezed."""
    B, C, H, W = x.shape
    HW = H * W
    BC = B * C
    dtype = x.dtype
    itemsize = jnp.dtype(dtype).itemsize

    k = int(conv_w.shape[0])
    assert k % 2 == 1, "ECA expects odd k (symmetric 'same' padding)"

    vmem_limit, budget = _vmem_budgets()

    # ---- row (sublane) blocking: flatten (B, C) into a dense row axis -------
    row_align = 8 if itemsize >= 4 else (16 if itemsize == 2 else 32)
    bpe2 = 4 * itemsize + 4          # pass-2 bytes/elem: 2x in + 2x out + f32 tmp
    if BC <= row_align:
        r_blk = BC                   # full-dim block, no alignment constraint
    else:
        # Prefer >= 2 row blocks so pass 1's 'parallel' row axis feeds both
        # v7x TensorCores even at B == 1; cap so a 128-lane column fits budget.
        r_cap = max(row_align, _round_down(budget // (128 * bpe2), row_align))
        r_blk = min(_round_up(pl.cdiv(BC, 2), row_align), r_cap)
    n_row = pl.cdiv(BC, r_blk)

    # ---- lane tiles (multiples of 128), sized from the VMEM budget ----------
    def pick_lanes(bytes_per_lane):
        t = max(128, _round_down(budget // bytes_per_lane, 128))
        return min(_round_up(HW, 128), t)

    t1 = pick_lanes(r_blk * (2 * itemsize + 4))   # 2x input buffers + f32 temp
    t2 = pick_lanes(r_blk * bpe2)                 # 2x in + 2x out + f32 temp
    n_hw1 = pl.cdiv(HW, t1)
    n_hw2 = pl.cdiv(HW, t2)

    x2d = x.reshape(BC, HW)          # metadata-only reshape, no HBM copy

    # ---- Pass 1: global spatial sums -> (BC, 1) ------------------------------
    sums = pl.pallas_call(
        functools.partial(_pool_sum_kernel, hw=HW, t_lanes=t1,
                          mask_tail=(HW % t1) != 0),
        out_shape=jax.ShapeDtypeStruct((BC, 1), jnp.float32),
        grid_spec=pltpu.PrefetchScalarGridSpec(
            num_scalar_prefetch=0,
            grid=(n_row, n_hw1),
            in_specs=[pl.BlockSpec((r_blk, t1), lambda r, t: (r, t))],
            out_specs=pl.BlockSpec((r_blk, 1), lambda r, t: (r, 0)),
        ),
        compiler_params=pltpu.CompilerParams(
            dimension_semantics=("parallel", "arbitrary"),
            vmem_limit_bytes=vmem_limit),
    )(x2d)

    # ---- tiny k-tap channel conv + sigmoid (plain JAX; 1/HW folded in) ------
    pad = (k - 1) // 2
    w = conv_w.astype(jnp.float32) / HW           # fold the average-pool divide
    y = sums.reshape(B, C)
    y_pad = jnp.pad(y, ((0, 0), (pad, pad)))
    y_conv = sum(w[tap] * y_pad[:, tap:tap + C] for tap in range(k))
    scale = jax.nn.sigmoid(y_conv).reshape(BC, 1)  # f32, kept f32 into pass 2

    # ---- Pass 2: lane-dense broadcast multiply -------------------------------
    out2d = pl.pallas_call(
        _scale_mul_kernel,
        out_shape=jax.ShapeDtypeStruct((BC, HW), dtype),
        grid_spec=pltpu.PrefetchScalarGridSpec(
            num_scalar_prefetch=0,
            grid=(n_row, n_hw2),
            in_specs=[pl.BlockSpec((r_blk, t2), lambda r, t: (r, t)),
                      pl.BlockSpec((r_blk, 1), lambda r, t: (r, 0))],
            out_specs=pl.BlockSpec((r_blk, t2), lambda r, t: (r, t)),
        ),
        compiler_params=pltpu.CompilerParams(
            dimension_semantics=("parallel", "parallel"),
            vmem_limit_bytes=vmem_limit),
    )(x2d, scale)

    return out2d.reshape(B, C, H, W)


def eca_reference(x, conv_w):
    """Pure-JAX reference matching the PyTorch module semantics."""
    B, C, H, W = x.shape
    y = jnp.mean(x.astype(jnp.float32), axis=(2, 3))          # (B, C)
    k = conv_w.shape[0]
    pad = (k - 1) // 2
    y_pad = jnp.pad(y, ((0, 0), (pad, pad)))
    y_conv = sum(conv_w[t].astype(jnp.float32) * y_pad[:, t:t + C]
                 for t in range(k))
    scale = jax.nn.sigmoid(y_conv)[:, :, None, None]
    return (x * scale).astype(x.dtype)


if __name__ == "__main__":
    key = jax.random.PRNGKey(0)
    kx, kw = jax.random.split(key)

    B, C, H, W = 2, 4, 16, 16
    k_size = 3
    x = jax.random.normal(kx, (B, C, H, W), dtype=jnp.float32)
    # Conv1d(1, 1, k_size, bias=False) weight has shape (1, 1, k_size); stored squeezed.
    conv_w = jax.random.normal(kw, (k_size,), dtype=jnp.float32) * 0.5

    out = eca_forward(x, conv_w)
    out = jax.block_until_ready(out)

    ref = eca_reference(x, conv_w)
    assert out.shape == (B, C, H, W)
    assert jnp.allclose(out, ref, atol=1e-5, rtol=1e-5), "mismatch vs reference"

    print("KERNEL_OK")
</pallas_src>

<mosaic_0001>
module attributes {stable_mosaic.version = 11 : i64} {
  func.func @_pool_sum_kernel(%arg0: i32, %arg1: i32, %arg2: memref<8x256xf32, #tpu.memory_space<vmem>>, %arg3: memref<8x1xf32, #tpu.memory_space<vmem>>) attributes {dimension_semantics = [#tpu.dimension_semantics<parallel>, #tpu.dimension_semantics<arbitrary>], iteration_bounds = array<i64: 1, 1>, scalar_prefetch = 0 : i64, scratch_operands = 0 : i64, tpu.core_type = #tpu.core_type<tc>, window_params = [{transform_indices = @transform_0, window_bounds = array<i64: 8, 256>}, {transform_indices = @transform_1, window_bounds = array<i64: 8, 1>}]} {
    %c0_i32 = arith.constant 0 : i32
    %0 = arith.cmpi eq, %arg1, %c0_i32 : i32
    %1 = arith.extui %0 : i1 to i32
    %c0_i32_0 = arith.constant 0 : i32
    %2 = arith.cmpi ne, %1, %c0_i32_0 : i32
    scf.if %2 {
      %cst_6 = arith.constant 0.000000e+00 : f32
      %9 = vector.broadcast %cst_6 : f32 to vector<8x1xf32>
      %c0_7 = arith.constant 0 : index
      %c0_8 = arith.constant 0 : index
      %10 = vector.load %arg3[%c0_7, %c0_8] : memref<8x1xf32, #tpu.memory_space<vmem>>, vector<8x1xf32>
      tpu.vector_store %arg3[%c0_7, %c0_8], %9 {strides = array<i32>} : memref<8x1xf32, #tpu.memory_space<vmem>>, vector<8x1xf32>,
    } else {
    }
    %c0 = arith.constant 0 : index
    %c0_1 = arith.constant 0 : index
    %3 = vector.load %arg2[%c0, %c0_1] : memref<8x256xf32, #tpu.memory_space<vmem>>, vector<8x256xf32>
    %c0_2 = arith.constant 0 : index
    %c0_3 = arith.constant 0 : index
    %4 = vector.load %arg3[%c0_2, %c0_3] : memref<8x1xf32, #tpu.memory_space<vmem>>, vector<8x1xf32>
    %cst = arith.constant dense<0.000000e+00> : vector<8xf32>
    %5 = vector.multi_reduction <add>, %3, %cst [1] : vector<8x256xf32> to vector<8xf32>
    %6 = vector.shape_cast %5 : vector<8xf32> to vector<8x1xf32>
    %7 = arith.addf %4, %6 : vector<8x1xf32>
    %c0_4 = arith.constant 0 : index
    %c0_5 = arith.constant 0 : index
    %8 = vector.load %arg3[%c0_4, %c0_5] : memref<8x1xf32, #tpu.memory_space<vmem>>, vector<8x1xf32>
    tpu.vector_store %arg3[%c0_4, %c0_5], %7 {strides = array<i32>} : memref<8x1xf32, #tpu.memory_space<vmem>>, vector<8x1xf32>,
    return
  }
  func.func @transform_0(%arg0: i32, %arg1: i32) -> (i32, i32) {
    %c0_i32 = arith.constant 0 : i32
    return %arg0, %arg1 : i32, i32
  }
  func.func @transform_1(%arg0: i32, %arg1: i32) -> (i32, i32) {
    %c0_i32 = arith.constant 0 : i32
    %c0_i32_0 = arith.constant 0 : i32
    return %arg0, %c0_i32 : i32, i32
  }
}

</mosaic_0001>

<bundles_post_ra>
// kernel: tpu_custom_call.1
= control target key start
LH: loop header
LB: loop body
LE: loop exit
PB: predicated region body
PF: predicated region fallthrough
CT: control target
= control target key end

     0   :  { %6 = vsyncpa [#allocation3], 0  ;;  %s66_s6 = smov [#allocation2]   ;;  %s99_s0 = inlined_call_operand.hbm [shape: f32[8,256], index: 0, kind: input, shape index: {}]   ;;  %s100_s1 = inlined_call_operand.vmem [shape: f32[8,1], index: 1, kind: output, shape index: {}]  }
   0x1   :  { %s13_s7 = sshll.u32 %s66_s6, 4  ;;  %s42_s10 = scalar_lea.hbm %s99_s0, 256  ;;  %s14_s7 = int_to_ptr.vmem [resolvable:$true] %s13_s7 }
   0x2   :  { %p43_p0 = scmp.ne.s32.totalorder %s99_s0, %s42_s10  ;;  %p46_p1 = scmp.lt.u32.totalorder %s42_s10, %s99_s0 }
   0x4   :  { %p48_p2 = pnand %p46_p1, %p43_p0 }
   0x6   :  { %51 = shalt.err (!%p48_p2)
}
   0x7   :  { %s52_s15 = scalar_lea.vmem %s14_s7, 256  ;;  %p57_p4 = scmp.lt.s32.totalorder %s14_s7, %s14_s7 }
   0x8   :  { %p53_p3 = scmp.ne.s32.totalorder %s14_s7, %s52_s15  ;;  %p58_p5 = scmp.lt.s32.totalorder %s52_s15, %s52_s15 }
   0xa   :  { %p59_p6 = por %p58_p5, %p57_p4 }
   0xc   :  { %p60_p7 = pnand %p59_p6, %p53_p3 }
   0xe   :  { %63 = shalt.err (!%p60_p7)
}
   0xf   :  { %16 = dma.hbm_to_vmem [thread:$0]  %s99_s0, 256, %s14_s7, [#allocation3]  }
  0x10   :  { %64 = dma.done.wait [#allocation3], 256  }
  0x11   :  { %65 = vsyncadd [#allocation3], 4294967040  ;;  %vm24_vm0 = vcmask 7168   ;;  %v67_v0 = vmov 0.0   ;;  %v26_v1 = vld [vmem:[#allocation2] sm:$0xff]  ;;  %v27_v2 = vld [vmem:[#allocation2 + $0x8] sm:$0xff] }
  0x12   :  { %25 = vst.msk [vmem:[%s100_s1] sm:$0xff] %vm24_vm0, %v67_v0  ;;  %v29_v3 = vadd.f32 %v27_v2, %v26_v1 }
  0x14   :  { %30 = vadd.xlane.f32.xlu0 %v29_v3 }
  0x19   :  { %v28_v4 = vld [vmem:[%s100_s1] sm:$0xff] }
  0xa1   :  { %v31_v5 = vpop.xlane.xlu0 %30 }
  0xa2   :  { %v32_v6 = vadd.f32 %v31_v5, %v28_v4 }
  0xa4   :  { %34 = vst.msk [vmem:[%s100_s1] sm:$0xff] %vm24_vm0, %v32_v6 }
  0xa5   :  { %39 = vsyncpa [#allocation3], 1 }

</bundles_post_ra>
